<compile_context>
chip_gen: v7x
topology: tpu7x:2x2x1
jax: 0.10.0
libtpu: 0.0.40
codegen_flags: <defaults>
</compile_context>

<pallas_src>
import jax
import jax.numpy as jnp
from jax.experimental import pallas as pl
from jax.experimental.pallas import tpu as pltpu


def _round_up(x, m):
    return ((x + m - 1) // m) * m


def _largest_divisor_tile(total, unit, cap):
    """Largest multiple of `unit` that divides `total` and is <= cap (>= unit)."""
    cap = max(unit, min(cap, total))
    best = unit
    t = unit
    while t <= cap:
        if total % t == 0:
            best = t
        t += unit
    return best


# Minimum second-to-last-dim tile per element size (f32 / bf16 / int8-fp8).
_SUBLANE = {4: 8, 2: 16, 1: 32}


def _linear_kernel_f32_out(x_ref, w_ref, b_ref, o_ref):
    """f32 output: accumulate directly into the resident output block."""
    k = pl.program_id(2)

    @pl.when(k == 0)
    def _():
        o_ref[...] = jnp.broadcast_to(b_ref[...], o_ref.shape)   # bias folded in

    o_ref[...] += jnp.dot(x_ref[...], w_ref[...],
                          preferred_element_type=jnp.float32)


def _linear_kernel_acc(x_ref, w_ref, b_ref, o_ref, acc_ref):
    """Non-f32 output: f32 VMEM scratch accumulator, cast once at the end."""
    k = pl.program_id(2)

    @pl.when(k == 0)
    def _():
        acc_ref[...] = jnp.broadcast_to(b_ref[...], acc_ref.shape)

    acc_ref[...] += jnp.dot(x_ref[...], w_ref[...],
                            preferred_element_type=jnp.float32)

    @pl.when(k == pl.num_programs(2) - 1)
    def _():
        o_ref[...] = acc_ref[...].astype(o_ref.dtype)


def linear_classifier_forward(x, weight, bias, *, compute_dtype=None,
                              max_tm=512, max_tn=512, max_tk=2048):
    """Forward pass matching LinearClassifier.forward.

    x:      (B, ...) any trailing shape; flattened to (B, D) row-major
    weight: (N, D)   nn.Linear weight (native layout; transposed once here)
    bias:   (N,)     nn.Linear bias
    compute_dtype: optional (e.g. jnp.bfloat16) for MXU inputs; accumulation
                   stays f32 and output keeps x's dtype.
    returns (B, N)
    """
    B = x.shape[0]
    x2d = x.reshape(B, -1)                 # torch x.view(B, -1)
    D = x2d.shape[1]
    N = weight.shape[0]
    out_dtype = x2d.dtype

    # One-time host transpose of the frozen weight -> (D, N) stationary operand.
    w_t = weight.T
    if compute_dtype is not None:
        x2d = x2d.astype(compute_dtype)
        w_t = w_t.astype(compute_dtype)
    in_dtype = x2d.dtype
    itemsize = jnp.dtype(in_dtype).itemsize
    sublane = _SUBLANE.get(itemsize, 8)
    if itemsize <= 2:                       # narrower inputs -> bigger K tiles
        max_tk = max(max_tk, 4096)

    # ---- alignment (pad x only if forced; weight/bias pads are cheap) ------
    B_pad = _round_up(B, sublane)
    D_pad = _round_up(D, 128)
    N_pad = _round_up(N, 128)

    if B_pad != B or D_pad != D:
        x_p = jnp.pad(x2d, ((0, B_pad - B), (0, D_pad - D)))
    else:
        x_p = x2d
    if D_pad != D or N_pad != N:
        w_p = jnp.pad(w_t, ((0, D_pad - D), (0, N_pad - N)))
    else:
        w_p = w_t
    b_p = jnp.pad(bias, (0, N_pad - N)) if N_pad != N else bias
    b_p = b_p.reshape(1, N_pad).astype(jnp.float32)

    # ---- tile selection: divisor tiles (no extra padding / wasted steps) ---
    tk = _largest_divisor_tile(D_pad, 128, max_tk)
    tn = _largest_divisor_tile(N_pad, 128, max_tn)
    tm = _largest_divisor_tile(B_pad, sublane, max_tm)

    # Expose >= 2 parallel blocks for v7x's two TensorCores when possible.
    if (B_pad // tm) * (N_pad // tn) < 2 and B_pad >= 2 * sublane:
        tm = _largest_divisor_tile(B_pad, sublane, B_pad // 2)

    grid = (B_pad // tm, N_pad // tn, D_pad // tk)
    m_blocks, n_blocks = grid[0], grid[1]

    use_scratch = (out_dtype != jnp.float32)
    kernel = _linear_kernel_acc if use_scratch else _linear_kernel_f32_out
    scratch_shapes = [pltpu.VMEM((tm, tn), jnp.float32)] if use_scratch else []

    out_itemsize = jnp.dtype(out_dtype).itemsize
    # Double-buffered inputs + output (+ optional scratch), plus headroom.
    vmem_bytes = (2 * (tm * tk + tk * tn) * itemsize
                  + 2 * tm * tn * out_itemsize
                  + (tm * tn * 4 if use_scratch else 0))
    vmem_limit = int(min(max(vmem_bytes + (4 << 20), 32 << 20), 56 << 20))

    cost = pl.CostEstimate(
        flops=2 * B_pad * N_pad * D_pad,
        transcendentals=0,
        bytes_accessed=(n_blocks * B_pad * D_pad * itemsize        # x per N block
                        + m_blocks * N_pad * D_pad * itemsize      # W per M block
                        + B_pad * N_pad * out_itemsize             # out
                        + N_pad * 4),                              # bias
    )

    out = pl.pallas_call(
        kernel,
        out_shape=jax.ShapeDtypeStruct((B_pad, N_pad), out_dtype),
        grid_spec=pltpu.PrefetchScalarGridSpec(
            num_scalar_prefetch=0,
            grid=grid,
            in_specs=[
                pl.BlockSpec((tm, tk), lambda i, j, k: (i, k)),   # x      (B, D)
                pl.BlockSpec((tk, tn), lambda i, j, k: (k, j)),   # weight (D, N)
                pl.BlockSpec((1, tn), lambda i, j, k: (0, j)),    # bias   (1, N)
            ],
            out_specs=pl.BlockSpec((tm, tn), lambda i, j, k: (i, j)),
            scratch_shapes=scratch_shapes,
        ),
        compiler_params=pltpu.CompilerParams(
            dimension_semantics=("parallel", "parallel", "arbitrary"),
            vmem_limit_bytes=vmem_limit),
        cost_estimate=cost,
    )(x_p, w_p, b_p)

    return out[:B, :N]


def init_linear_classifier_params(key, dim, num_labels):
    """Deterministic init matching LinearClassifier.__init__:
       weight ~ N(0, 0.01), bias = 0."""
    (w_key,) = jax.random.split(key, 1)
    weight = 0.01 * jax.random.normal(w_key, (num_labels, dim), dtype=jnp.float32)
    bias = jnp.zeros((num_labels,), dtype=jnp.float32)
    return weight, bias


if __name__ == "__main__":
    # Small frozen-feature shapes: (B=2, C=4, H=16, W=16) -> dim = 1024.
    B, C, H, W = 2, 4, 16, 16
    dim = C * H * W          # 1024
    num_labels = 16

    key = jax.random.PRNGKey(0)
    k_x, k_p = jax.random.split(key)
    x = jax.random.normal(k_x, (B, C, H, W), dtype=jnp.float32)
    weight, bias = init_linear_classifier_params(k_p, dim, num_labels)

    # f32 path: must match the plain JAX reference.
    logits = linear_classifier_forward(x, weight, bias)
    jax.block_until_ready(logits)
    ref = x.reshape(B, -1) @ weight.T + bias
    assert logits.shape == (B, num_labels)
    assert jnp.allclose(logits, ref, atol=1e-5, rtol=1e-5)

    # bf16-input path (halved HBM traffic, f32 accumulate): smoke test only --
    # it intentionally differs from the f32 reference in the last bits.
    logits_bf16 = linear_classifier_forward(x, weight, bias,
                                            compute_dtype=jnp.bfloat16)
    jax.block_until_ready(logits_bf16)
    assert logits_bf16.shape == (B, num_labels)

    print("KERNEL_OK")
</pallas_src>

<mosaic_0001>
module attributes {stable_mosaic.version = 11 : i64} {
  func.func @_linear_kernel_f32_out(%arg0: i32, %arg1: i32, %arg2: i32, %arg3: memref<8x1024xf32, #tpu.memory_space<vmem>>, %arg4: memref<1024x128xf32, #tpu.memory_space<vmem>>, %arg5: memref<1x128xf32, #tpu.memory_space<vmem>>, %arg6: memref<8x128xf32, #tpu.memory_space<vmem>>) attributes {dimension_semantics = [#tpu.dimension_semantics<parallel>, #tpu.dimension_semantics<parallel>, #tpu.dimension_semantics<arbitrary>], iteration_bounds = array<i64: 1, 1, 1>, scalar_prefetch = 0 : i64, scratch_operands = 0 : i64, tpu.core_type = #tpu.core_type<tc>, window_params = [{transform_indices = @transform_0, window_bounds = array<i64: 8, 1024>}, {transform_indices = @transform_1, window_bounds = array<i64: 1024, 128>}, {transform_indices = @transform_2, window_bounds = array<i64: 1, 128>}, {transform_indices = @transform_3, window_bounds = array<i64: 8, 128>}]} {
    %c0_i32 = arith.constant 0 : i32
    %0 = arith.cmpi eq, %arg2, %c0_i32 : i32
    %1 = arith.extui %0 : i1 to i32
    %c0_i32_0 = arith.constant 0 : i32
    %2 = arith.cmpi ne, %1, %c0_i32_0 : i32
    scf.if %2 {
      %c0_8 = arith.constant 0 : index
      %c0_9 = arith.constant 0 : index
      %9 = vector.load %arg5[%c0_8, %c0_9] : memref<1x128xf32, #tpu.memory_space<vmem>>, vector<1x128xf32>
      %10 = vector.shape_cast %9 : vector<1x128xf32> to vector<1x128xf32>
      %11 = vector.broadcast %10 : vector<1x128xf32> to vector<8x128xf32>
      %c0_10 = arith.constant 0 : index
      %c0_11 = arith.constant 0 : index
      %12 = vector.load %arg6[%c0_10, %c0_11] : memref<8x128xf32, #tpu.memory_space<vmem>>, vector<8x128xf32>
      tpu.vector_store %arg6[%c0_10, %c0_11], %11 {strides = array<i32>} : memref<8x128xf32, #tpu.memory_space<vmem>>, vector<8x128xf32>,
    } else {
    }
    %c0 = arith.constant 0 : index
    %c0_1 = arith.constant 0 : index
    %3 = vector.load %arg6[%c0, %c0_1] : memref<8x128xf32, #tpu.memory_space<vmem>>, vector<8x128xf32>
    %c0_2 = arith.constant 0 : index
    %c0_3 = arith.constant 0 : index
    %4 = vector.load %arg3[%c0_2, %c0_3] : memref<8x1024xf32, #tpu.memory_space<vmem>>, vector<8x1024xf32>
    %c0_4 = arith.constant 0 : index
    %c0_5 = arith.constant 0 : index
    %5 = vector.load %arg4[%c0_4, %c0_5] : memref<1024x128xf32, #tpu.memory_space<vmem>>, vector<1024x128xf32>
    %cst = arith.constant dense<0.000000e+00> : vector<8x128xf32>
    %6 = tpu.matmul %4, %5, %cst {dimension_numbers = #tpu.dot_dimension_numbers<[1], [0], [0], [1], [0, 0, 1, 1], [], []>} : vector<8x1024xf32>, vector<1024x128xf32>, vector<8x128xf32> -> vector<8x128xf32>
    %7 = arith.addf %3, %6 : vector<8x128xf32>
    %c0_6 = arith.constant 0 : index
    %c0_7 = arith.constant 0 : index
    %8 = vector.load %arg6[%c0_6, %c0_7] : memref<8x128xf32, #tpu.memory_space<vmem>>, vector<8x128xf32>
    tpu.vector_store %arg6[%c0_6, %c0_7], %7 {strides = array<i32>} : memref<8x128xf32, #tpu.memory_space<vmem>>, vector<8x128xf32>,
    return
  }
  func.func @transform_0(%arg0: i32, %arg1: i32, %arg2: i32) -> (i32, i32) {
    %c0_i32 = arith.constant 0 : i32
    return %arg0, %arg2 : i32, i32
  }
  func.func @transform_1(%arg0: i32, %arg1: i32, %arg2: i32) -> (i32, i32) {
    %c0_i32 = arith.constant 0 : i32
    return %arg2, %arg1 : i32, i32
  }
  func.func @transform_2(%arg0: i32, %arg1: i32, %arg2: i32) -> (i32, i32) {
    %c0_i32 = arith.constant 0 : i32
    %c0_i32_0 = arith.constant 0 : i32
    return %c0_i32, %arg1 : i32, i32
  }
  func.func @transform_3(%arg0: i32, %arg1: i32, %arg2: i32) -> (i32, i32) {
    %c0_i32 = arith.constant 0 : i32
    return %arg0, %arg1 : i32, i32
  }
}

</mosaic_0001>

<bundles_post_ra>
// kernel: tpu_custom_call.1
= control target key start
LH: loop header
LB: loop body
LE: loop exit
PB: predicated region body
PF: predicated region fallthrough
CT: control target
= control target key end

     0   :  { %8 = vsyncpa [#allocation3], 0  ;;  %s905_s0 = inlined_call_operand.hbm [shape: f32[8,1024], index: 0, kind: input, shape index: {}]   ;;  %s906_s1 = inlined_call_operand.hbm [shape: f32[1024,128], index: 1, kind: input, shape index: {}]   ;;  %s907_s2 = inlined_call_operand.vmem [shape: f32[1,128], index: 2, kind: input, shape index: {}]   ;;  %s908_s3 = inlined_call_operand.hbm [shape: f32[8,128], index: 3, kind: output, shape index: {}]  }
   0x1   :  { %9 = vsyncpa [#allocation6], 0 }
   0x2   :  { %10 = vsyncpa [#allocation4], 0  ;;  %s834_s12 = smov [#allocation2]   ;;  %s835_s14 = smov [#allocation5]  }
   0x3   :  { %s17_s13 = sshll.u32 %s834_s12, 4  ;;  %s26_s15 = sshll.u32 %s835_s14, 4  ;;  %s18_s13 = int_to_ptr.vmem [resolvable:$true] %s17_s13  ;;  %s859_s15 = int_to_ptr.vmem [resolvable:$true] %s26_s15 }
   0x4   :  { %s762_s18 = scalar_lea.hbm %s905_s0, 1024 }
   0x5   :  { %p763_p0 = scmp.ne.s32.totalorder %s905_s0, %s762_s18  ;;  %p766_p1 = scmp.lt.u32.totalorder %s762_s18, %s905_s0 }
   0x7   :  { %p768_p2 = pnand %p766_p1, %p763_p0 }
   0x9   :  { %771 = shalt.err (!%p768_p2)
}
   0xa   :  { %s772_s23 = scalar_lea.vmem %s18_s13, 1024  ;;  %p777_p4 = scmp.lt.s32.totalorder %s18_s13, %s18_s13 }
   0xb   :  { %p773_p3 = scmp.ne.s32.totalorder %s18_s13, %s772_s23  ;;  %p778_p5 = scmp.lt.s32.totalorder %s772_s23, %s772_s23 }
   0xd   :  { %p779_p6 = por %p778_p5, %p777_p4 }
   0xf   :  { %p780_p7 = pnand %p779_p6, %p773_p3 }
  0x11   :  { %783 = shalt.err (!%p780_p7)
}
  0x12   :  { %20 = dma.hbm_to_vmem [thread:$0]  %s905_s0, 1024, %s18_s13, [#allocation3]  }
  0x13   :  { %s784_s28 = scalar_lea.hbm %s906_s1, 16384 }
  0x14   :  { %p785_p8 = scmp.ne.s32.totalorder %s906_s1, %s784_s28  ;;  %p788_p9 = scmp.lt.u32.totalorder %s784_s28, %s906_s1 }
  0x16   :  { %p790_p10 = pnand %p788_p9, %p785_p8 }
  0x18   :  { %793 = shalt.err (!%p790_p10)
}
  0x19   :  { %s794_s6 = scalar_lea.vmem %s859_s15, 16384  ;;  %p799_p12 = scmp.lt.s32.totalorder %s859_s15, %s859_s15 }
  0x1a   :  { %p795_p11 = scmp.ne.s32.totalorder %s859_s15, %s794_s6  ;;  %p800_p13 = scmp.lt.s32.totalorder %s794_s6, %s794_s6 }
  0x1c   :  { %p801_p0 = por %p800_p13, %p799_p12 }
  0x1e   :  { %p802_p1 = pnand %p801_p0, %p795_p11 }
  0x20   :  { %805 = shalt.err (!%p802_p1)
}
  0x21   :  { %s836_s0 = smov 128   ;;  %s837_s7 = smov 8  }
  0x22   :  { %32 = dma.hbm_to_vmem [thread:$0]  %s906_s1, 16384, %s859_s15, [#allocation6], %s836_s0, %s836_s0, %s837_s7  }
  0x23   :  { %828 = dma.done.wait [#allocation3], 1024  }
  0x24   :  { %829 = vsyncadd [#allocation3], 4294966272 }
  0x25   :  { %830 = dma.done.wait [#allocation6], 16384  }
  0x26   :  { %831 = vsyncadd [#allocation6], 4294950912  ;;  %v78_v0 = vld [vmem:[#allocation5 + $0x80] sm:$0xff]  ;;  %v79_v1 = vld [vmem:[#allocation5 + $0x88] sm:$0xff]  ;;  %s838_s11 = smov [#allocation7]  }
  0x27   :  { %v110_v2 = vld [vmem:[#allocation5 + $0x180] sm:$0xff]  ;;  %v629_v3 = vpack.c.bf16 %v79_v1, %v78_v0  ;;  %v111_v4 = vld [vmem:[#allocation5 + $0x188] sm:$0xff]  ;;  %v80_v11 = vld [vmem:[#allocation5 + $0x90] sm:$0xff]  ;;  %s478_s12 = sshll.u32 %s838_s11, 4  ;;  %s479_s12 = int_to_ptr.vmem [resolvable:$true] %s478_s12 }
  0x28   :  { %v62_v5 = vld [vmem:[#allocation5] sm:$0xff]  ;;  %v63_v6 = vld [vmem:[#allocation5 + $0x8] sm:$0xff]  ;;  %v661_v7 = vpack.c.bf16 %v111_v4, %v110_v2  ;;  %v81_v13 = vld [vmem:[#allocation5 + $0x98] sm:$0xff]  ;;  %s806_s13 = scalar_lea.vmem %s479_s12, 128  ;;  %p811_p3 = scmp.lt.s32.totalorder %s479_s12, %s479_s12 }
  0x29   :  { %v631_v8 = vpack.c.bf16 %v63_v6, %v62_v5  ;;  %v94_v9 = vld [vmem:[#allocation5 + $0x100] sm:$0xff]  ;;  %v95_v10 = vld [vmem:[#allocation5 + $0x108] sm:$0xff]  ;;  %630 = vmatprep.subr.bf16.mxu0 %v629_v3  ;;  %v112_v14 = vld [vmem:[#allocation5 + $0x190] sm:$0xff]  ;;  %v633_v16 = vpack.c.bf16 %v81_v13, %v80_v11  ;;  %p807_p2 = scmp.ne.s32.totalorder %s479_s12, %s806_s13  ;;  %p812_p4 = scmp.lt.s32.totalorder %s806_s13, %s806_s13 }
  0x2a   :  { %v663_v12 = vpack.c.bf16 %v95_v10, %v94_v9  ;;  %v113_v15 = vld [vmem:[#allocation5 + $0x198] sm:$0xff]  ;;  %662 = vmatprep.subr.bf16.mxu1 %v661_v7  ;;  %v64_v18 = vld [vmem:[#allocation5 + $0x10] sm:$0xff]  ;;  %v82_v23 = vld [vmem:[#allocation5 + $0xa0] sm:$0xff] }
  0x2b   :  { %632 = vmatpush3.bf16.msra.mxu0 %v631_v8  ;;  %v665_v17 = vpack.c.bf16 %v113_v15, %v112_v14  ;;  %v65_v19 = vld [vmem:[#allocation5 + $0x18] sm:$0xff]  ;;  %v96_v20 = vld [vmem:[#allocation5 + $0x110] sm:$0xff]  ;;  %v83_v24 = vld [vmem:[#allocation5 + $0xa8] sm:$0xff]  ;;  %p813_p5 = por %p812_p4, %p811_p3 }
  0x2c   :  { %664 = vmatpush3.bf16.msra.mxu1 %v663_v12  ;;  %v635_v21 = vpack.c.bf16 %v65_v19, %v64_v18  ;;  %v97_v22 = vld [vmem:[#allocation5 + $0x118] sm:$0xff]  ;;  %634 = vmatprep.subr.bf16.mxu0 %v633_v16  ;;  %v637_v26 = vpack.c.bf16 %v83_v24, %v82_v23  ;;  %v114_v27 = vld [vmem:[#allocation5 + $0x1a0] sm:$0xff]  ;;  %v115_v28 = vld [vmem:[#allocation5 + $0x1a8] sm:$0xff] }
  0x2d   :  { %666 = vmatprep.subr.bf16.mxu1 %v665_v17  ;;  %v667_v25 = vpack.c.bf16 %v97_v22, %v96_v20  ;;  %v66_v29 = vld [vmem:[#allocation5 + $0x20] sm:$0xff]  ;;  %v669_v30 = vpack.c.bf16 %v115_v28, %v114_v27  ;;  %v67_v31 = vld [vmem:[#allocation5 + $0x28] sm:$0xff]  ;;  %v84_v35 = vld [vmem:[#allocation5 + $0xb0] sm:$0xff]  ;;  %p814_p6 = pnand %p813_p5, %p807_p2 }
  0x2e   :  { %v98_v32 = vld [vmem:[#allocation5 + $0x120] sm:$0xff]  ;;  %v99_v33 = vld [vmem:[#allocation5 + $0x128] sm:$0xff]  ;;  %v639_v34 = vpack.c.bf16 %v67_v31, %v66_v29  ;;  %v85_v36 = vld [vmem:[#allocation5 + $0xb8] sm:$0xff] }
  0x2f   :  { %636 = vmatpush3.bf16.msra.mxu0 %v635_v21  ;;  %v116_v37 = vld [vmem:[#allocation5 + $0x1b0] sm:$0xff]  ;;  %v671_v38 = vpack.c.bf16 %v99_v33, %v98_v32  ;;  %v641_v39 = vpack.c.bf16 %v85_v36, %v84_v35  ;;  %v117_v40 = vld [vmem:[#allocation5 + $0x1b8] sm:$0xff]  ;;  %v86_v46 = vld [vmem:[#allocation5 + $0xc0] sm:$0xff] }
  0x30   :  { %668 = vmatpush3.bf16.msra.mxu1 %v667_v25  ;;  %638 = vmatprep.subr.bf16.mxu0 %v637_v26  ;;  %v68_v41 = vld [vmem:[#allocation5 + $0x30] sm:$0xff]  ;;  %v69_v42 = vld [vmem:[#allocation5 + $0x38] sm:$0xff]  ;;  %v673_v43 = vpack.c.bf16 %v117_v40, %v116_v37  ;;  %v87_v47 = vld [vmem:[#allocation5 + $0xc8] sm:$0xff] }
  0x31   :  { %670 = vmatprep.subr.bf16.mxu1 %v669_v30  ;;  %v100_v44 = vld [vmem:[#allocation5 + $0x130] sm:$0xff]  ;;  %v101_v45 = vld [vmem:[#allocation5 + $0x138] sm:$0xff]  ;;  %v118_v48 = vld [vmem:[#allocation5 + $0x1c0] sm:$0xff]  ;;  %v643_v50 = vpack.c.bf16 %v69_v42, %v68_v41  ;;  %v645_v52 = vpack.c.bf16 %v87_v47, %v86_v46 }
  0x32   :  { %v119_v49 = vld [vmem:[#allocation5 + $0x1c8] sm:$0xff]  ;;  %v675_v51 = vpack.c.bf16 %v101_v45, %v100_v44  ;;  %v70_v53 = vld [vmem:[#allocation5 + $0x40] sm:$0xff]  ;;  %v88_v58 = vld [vmem:[#allocation5 + $0xd0] sm:$0xff] }
  0x33   :  { %640 = vmatpush3.bf16.msra.mxu0 %v639_v34  ;;  %v71_v54 = vld [vmem:[#allocation5 + $0x48] sm:$0xff]  ;;  %v102_v55 = vld [vmem:[#allocation5 + $0x140] sm:$0xff]  ;;  %v677_v56 = vpack.c.bf16 %v119_v49, %v118_v48  ;;  %v89_v59 = vld [vmem:[#allocation5 + $0xd8] sm:$0xff] }
  0x34   :  { %672 = vmatpush3.bf16.msra.mxu1 %v671_v38  ;;  %642 = vmatprep.subr.bf16.mxu0 %v641_v39  ;;  %v103_v57 = vld [vmem:[#allocation5 + $0x148] sm:$0xff]  ;;  %v120_v60 = vld [vmem:[#allocation5 + $0x1d0] sm:$0xff]  ;;  %v121_v61 = vld [vmem:[#allocation5 + $0x1d8] sm:$0xff]  ;;  %v647_v62 = vpack.c.bf16 %v71_v54, %v70_v53  ;;  %v649_v0 = vpack.c.bf16 %v89_v59, %v88_v58 }
  0x35   :  { %674 = vmatprep.subr.bf16.mxu1 %v673_v43  ;;  %v679_v63 = vpack.c.bf16 %v103_v57, %v102_v55  ;;  %v72_v1 = vld [vmem:[#allocation5 + $0x50] sm:$0xff]  ;;  %v73_v2 = vld [vmem:[#allocation5 + $0x58] sm:$0xff]  ;;  %v681_v4 = vpack.c.bf16 %v121_v61, %v120_v60  ;;  %v90_v6 = vld [vmem:[#allocation5 + $0xe0] sm:$0xff] }
  0x36   :  { %v104_v3 = vld [vmem:[#allocation5 + $0x150] sm:$0xff]  ;;  %v105_v5 = vld [vmem:[#allocation5 + $0x158] sm:$0xff]  ;;  %v91_v7 = vld [vmem:[#allocation5 + $0xe8] sm:$0xff]  ;;  %v651_v10 = vpack.c.bf16 %v73_v2, %v72_v1 }
  0x37   :  { %644 = vmatpush3.bf16.msra.mxu0 %v643_v50  ;;  %v122_v8 = vld [vmem:[#allocation5 + $0x1e0] sm:$0xff]  ;;  %v123_v9 = vld [vmem:[#allocation5 + $0x1e8] sm:$0xff]  ;;  %v683_v13 = vpack.c.bf16 %v105_v5, %v104_v3  ;;  %v653_v14 = vpack.c.bf16 %v91_v7, %v90_v6  ;;  %v57_v17 = vld [vmem:[#allocation2 + $0x18] sm:$0xff] }
  0x38   :  { %676 = vmatpush3.bf16.msra.mxu1 %v675_v51  ;;  %646 = vmatprep.subr.bf16.mxu0 %v645_v52  ;;  %v74_v11 = vld [vmem:[#allocation5 + $0x60] sm:$0xff]  ;;  %v75_v12 = vld [vmem:[#allocation5 + $0x68] sm:$0xff]  ;;  %v685_v18 = vpack.c.bf16 %v123_v9, %v122_v8  ;;  %v92_v20 = vld [vmem:[#allocation5 + $0xf0] sm:$0xff] }
  0x39   :  { %678 = vmatprep.subr.bf16.mxu1 %v677_v56  ;;  %v106_v15 = vld [vmem:[#allocation5 + $0x160] sm:$0xff]  ;;  %v55_v16 = vld [vmem:[#allocation2 + $0x8] sm:$0xff]  ;;  %v93_v21 = vld [vmem:[#allocation5 + $0xf8] sm:$0xff]  ;;  %324 = vmatprep.mubr.f32.mxu1 %v57_v17  ;;  %v655_v24 = vpack.c.bf16 %v75_v12, %v74_v11 }
  0x3a   :  { %v107_v19 = vld [vmem:[#allocation5 + $0x168] sm:$0xff]  ;;  %254 = vmatprep.mubr.f32.mxu0 %v55_v16  ;;  %v124_v22 = vld [vmem:[#allocation5 + $0x1f0] sm:$0xff]  ;;  %v125_v23 = vld [vmem:[#allocation5 + $0x1f8] sm:$0xff]  ;;  %v657_v26 = vpack.c.bf16 %v93_v21, %v92_v20 }
  0x3b   :  { %648 = vmatpush3.bf16.msra.mxu0 %v647_v62  ;;  %v687_v25 = vpack.c.bf16 %v107_v19, %v106_v15  ;;  %v76_v27 = vld [vmem:[#allocation5 + $0x70] sm:$0xff]  ;;  %v77_v28 = vld [vmem:[#allocation5 + $0x78] sm:$0xff]  ;;  %v689_v30 = vpack.c.bf16 %v125_v23, %v124_v22  ;;  %v142_v32 = vld [vmem:[#allocation5 + $0x280] sm:$0xff] }
  0x3c   :  { %680 = vmatpush3.bf16.msra.mxu1 %v679_v63  ;;  %650 = vmatprep.subr.bf16.mxu0 %v649_v0  ;;  %v108_v29 = vld [vmem:[#allocation5 + $0x170] sm:$0xff]  ;;  %v109_v31 = vld [vmem:[#allocation5 + $0x178] sm:$0xff]  ;;  %v143_v33 = vld [vmem:[#allocation5 + $0x288] sm:$0xff]  ;;  %v659_v36 = vpack.c.bf16 %v77_v28, %v76_v27 }
  0x3d   :  { %682 = vmatprep.subr.bf16.mxu1 %v681_v4  ;;  %v174_v34 = vld [vmem:[#allocation5 + $0x380] sm:$0xff]  ;;  %v175_v35 = vld [vmem:[#allocation5 + $0x388] sm:$0xff]  ;;  %v691_v37 = vpack.c.bf16 %v109_v31, %v108_v29  ;;  %v693_v38 = vpack.c.bf16 %v143_v33, %v142_v32  ;;  %v144_v44 = vld [vmem:[#allocation5 + $0x290] sm:$0xff] }
  0x3e   :  { %v126_v39 = vld [vmem:[#allocation5 + $0x200] sm:$0xff]  ;;  %v127_v40 = vld [vmem:[#allocation5 + $0x208] sm:$0xff]  ;;  %v725_v42 = vpack.c.bf16 %v175_v35, %v174_v34  ;;  %v145_v45 = vld [vmem:[#allocation5 + $0x298] sm:$0xff] }
  0x3f   :  { %652 = vmatpush3.bf16.msra.mxu0 %v651_v10  ;;  %v158_v41 = vld [vmem:[#allocation5 + $0x300] sm:$0xff]  ;;  %v159_v43 = vld [vmem:[#allocation5 + $0x308] sm:$0xff]  ;;  %v176_v46 = vld [vmem:[#allocation5 + $0x390] sm:$0xff]  ;;  %v695_v50 = vpack.c.bf16 %v127_v40, %v126_v39  ;;  %v697_v52 = vpack.c.bf16 %v145_v45, %v144_v44 }
  0x40   :  { %684 = vmatpush3.bf16.msra.mxu1 %v683_v13  ;;  %654 = vmatprep.subr.bf16.mxu0 %v653_v14  ;;  %v177_v47 = vld [vmem:[#allocation5 + $0x398] sm:$0xff]  ;;  %v54_v48 = vld [vmem:[#allocation2] sm:$0xff]  ;;  %v56_v49 = vld [vmem:[#allocation2 + $0x10] sm:$0xff]  ;;  %v727_v51 = vpack.c.bf16 %v159_v43, %v158_v41 }
  0x41   :  { %686 = vmatprep.subr.bf16.mxu1 %v685_v18  ;;  %v128_v53 = vld [vmem:[#allocation5 + $0x210] sm:$0xff]  ;;  %v129_v54 = vld [vmem:[#allocation5 + $0x218] sm:$0xff]  ;;  %v729_v56 = vpack.c.bf16 %v177_v47, %v176_v46  ;;  %v146_v58 = vld [vmem:[#allocation5 + $0x2a0] sm:$0xff] }
  0x42   :  { %v160_v55 = vld [vmem:[#allocation5 + $0x310] sm:$0xff]  ;;  %v161_v57 = vld [vmem:[#allocation5 + $0x318] sm:$0xff]  ;;  %v147_v59 = vld [vmem:[#allocation5 + $0x2a8] sm:$0xff]  ;;  %v699_v62 = vpack.c.bf16 %v129_v54, %v128_v53 }
  0x43   :  { %656 = vmatpush3.bf16.msra.mxu0 %v655_v24  ;;  %v178_v60 = vld [vmem:[#allocation5 + $0x3a0] sm:$0xff]  ;;  %v179_v61 = vld [vmem:[#allocation5 + $0x3a8] sm:$0xff]  ;;  %v731_v63 = vpack.c.bf16 %v161_v57, %v160_v55  ;;  %v701_v0 = vpack.c.bf16 %v147_v59, %v146_v58  ;;  %v148_v6 = vld [vmem:[#allocation5 + $0x2b0] sm:$0xff] }
  0x44   :  { %688 = vmatpush3.bf16.msra.mxu1 %v687_v25  ;;  %658 = vmatprep.subr.bf16.mxu0 %v657_v26  ;;  %v130_v1 = vld [vmem:[#allocation5 + $0x220] sm:$0xff]  ;;  %v131_v2 = vld [vmem:[#allocation5 + $0x228] sm:$0xff]  ;;  %v733_v4 = vpack.c.bf16 %v179_v61, %v178_v60  ;;  %v149_v7 = vld [vmem:[#allocation5 + $0x2b8] sm:$0xff] }
  0x45   :  { %690 = vmatprep.subr.bf16.mxu1 %v689_v30  ;;  %v162_v3 = vld [vmem:[#allocation5 + $0x320] sm:$0xff]  ;;  %v163_v5 = vld [vmem:[#allocation5 + $0x328] sm:$0xff]  ;;  %v180_v8 = vld [vmem:[#allocation5 + $0x3b0] sm:$0xff]  ;;  %v703_v10 = vpack.c.bf16 %v131_v2, %v130_v1  ;;  %v705_v12 = vpack.c.bf16 %v149_v7, %v148_v6 }
  0x46   :  { %v181_v9 = vld [vmem:[#allocation5 + $0x3b8] sm:$0xff]  ;;  %v735_v11 = vpack.c.bf16 %v163_v5, %v162_v3  ;;  %v132_v13 = vld [vmem:[#allocation5 + $0x230] sm:$0xff]  ;;  %v150_v18 = vld [vmem:[#allocation5 + $0x2c0] sm:$0xff] }
  0x47   :  { %660 = vmatpush3.bf16.msra.mxu0 %v659_v36  ;;  %v133_v14 = vld [vmem:[#allocation5 + $0x238] sm:$0xff]  ;;  %v164_v15 = vld [vmem:[#allocation5 + $0x330] sm:$0xff]  ;;  %v737_v16 = vpack.c.bf16 %v181_v9, %v180_v8  ;;  %v151_v19 = vld [vmem:[#allocation5 + $0x2c8] sm:$0xff] }
  0x48   :  { %692 = vmatpush3.bf16.msra.mxu1 %v691_v37  ;;  %694 = vmatprep.subr.bf16.mxu0 %v693_v38  ;;  %v165_v17 = vld [vmem:[#allocation5 + $0x338] sm:$0xff]  ;;  %v182_v20 = vld [vmem:[#allocation5 + $0x3c0] sm:$0xff]  ;;  %v183_v21 = vld [vmem:[#allocation5 + $0x3c8] sm:$0xff]  ;;  %v707_v22 = vpack.c.bf16 %v133_v14, %v132_v13  ;;  %v709_v26 = vpack.c.bf16 %v151_v19, %v150_v18 }
  0x49   :  { %726 = vmatprep.subr.bf16.mxu1 %v725_v42  ;;  %v59_v23 = vld [vmem:[#allocation2 + $0x28] sm:$0xff]  ;;  %v61_v24 = vld [vmem:[#allocation2 + $0x38] sm:$0xff]  ;;  %v739_v25 = vpack.c.bf16 %v165_v17, %v164_v15  ;;  %v134_v27 = vld [vmem:[#allocation5 + $0x240] sm:$0xff]  ;;  %v741_v30 = vpack.c.bf16 %v183_v21, %v182_v20 }
  0x4a   :  { %255 = vmatmul.mubr.f32.vlgmr.msra.gmra.mrb[0].mxu0 %v54_v48  ;;  %v135_v28 = vld [vmem:[#allocation5 + $0x248] sm:$0xff]  ;;  %v166_v29 = vld [vmem:[#allocation5 + $0x340] sm:$0xff]  ;;  %v152_v32 = vld [vmem:[#allocation5 + $0x2d0] sm:$0xff] }
  0x4b   :  { %325 = vmatmul.mubr.f32.vlgmr.msra.gmra.mrb[0].mxu1 %v56_v49  ;;  %696 = vmatpush3.bf16.msra.mxu0 %v695_v50  ;;  %v167_v31 = vld [vmem:[#allocation5 + $0x348] sm:$0xff]  ;;  %v153_v33 = vld [vmem:[#allocation5 + $0x2d8] sm:$0xff]  ;;  %v184_v34 = vld [vmem:[#allocation5 + $0x3d0] sm:$0xff]  ;;  %v711_v36 = vpack.c.bf16 %v135_v28, %v134_v27 }
  0x4c   :  { %728 = vmatpush3.bf16.msra.mxu1 %v727_v51  ;;  %698 = vmatprep.subr.bf16.mxu0 %v697_v52  ;;  %v185_v35 = vld [vmem:[#allocation5 + $0x3d8] sm:$0xff]  ;;  %v743_v37 = vpack.c.bf16 %v167_v31, %v166_v29  ;;  %v713_v38 = vpack.c.bf16 %v153_v33, %v152_v32  ;;  %v136_v39 = vld [vmem:[#allocation5 + $0x250] sm:$0xff]  ;;  %v154_v44 = vld [vmem:[#allocation5 + $0x2e0] sm:$0xff] }
  0x4d   :  { %730 = vmatprep.subr.bf16.mxu1 %v729_v56  ;;  %394 = vmatprep.mubr.f32.mxu0 %v59_v23  ;;  %v137_v40 = vld [vmem:[#allocation5 + $0x258] sm:$0xff]  ;;  %v168_v41 = vld [vmem:[#allocation5 + $0x350] sm:$0xff]  ;;  %v745_v42 = vpack.c.bf16 %v185_v35, %v184_v34  ;;  %v155_v45 = vld [vmem:[#allocation5 + $0x2e8] sm:$0xff] }
  0x4e   :  { %464 = vmatprep.mubr.f32.mxu1 %v61_v24  ;;  %v169_v43 = vld [vmem:[#allocation5 + $0x358] sm:$0xff]  ;;  %v186_v46 = vld [vmem:[#allocation5 + $0x3e0] sm:$0xff]  ;;  %v187_v47 = vld [vmem:[#allocation5 + $0x3e8] sm:$0xff]  ;;  %v715_v48 = vpack.c.bf16 %v137_v40, %v136_v39  ;;  %v717_v50 = vpack.c.bf16 %v155_v45, %v154_v44 }
  0x4f   :  { %700 = vmatpush3.bf16.msra.mxu0 %v699_v62  ;;  %v747_v49 = vpack.c.bf16 %v169_v43, %v168_v41  ;;  %v138_v51 = vld [vmem:[#allocation5 + $0x260] sm:$0xff]  ;;  %v139_v52 = vld [vmem:[#allocation5 + $0x268] sm:$0xff]  ;;  %v749_v54 = vpack.c.bf16 %v187_v47, %v186_v46  ;;  %v156_v56 = vld [vmem:[#allocation5 + $0x2f0] sm:$0xff] }
  0x50   :  { %732 = vmatpush3.bf16.msra.mxu1 %v731_v63  ;;  %702 = vmatprep.subr.bf16.mxu0 %v701_v0  ;;  %v170_v53 = vld [vmem:[#allocation5 + $0x360] sm:$0xff]  ;;  %v171_v55 = vld [vmem:[#allocation5 + $0x368] sm:$0xff]  ;;  %v157_v57 = vld [vmem:[#allocation5 + $0x2f8] sm:$0xff]  ;;  %v719_v60 = vpack.c.bf16 %v139_v52, %v138_v51 }
  0x51   :  { %734 = vmatprep.subr.bf16.mxu1 %v733_v4  ;;  %v188_v58 = vld [vmem:[#allocation5 + $0x3f0] sm:$0xff]  ;;  %v189_v59 = vld [vmem:[#allocation5 + $0x3f8] sm:$0xff]  ;;  %v751_v61 = vpack.c.bf16 %v171_v55, %v170_v53  ;;  %v721_v62 = vpack.c.bf16 %v157_v57, %v156_v56  ;;  %v58_v6 = vld [vmem:[#allocation2 + $0x20] sm:$0xff] }
  0x52   :  { %v140_v63 = vld [vmem:[#allocation5 + $0x270] sm:$0xff]  ;;  %v141_v0 = vld [vmem:[#allocation5 + $0x278] sm:$0xff]  ;;  %v753_v1 = vpack.c.bf16 %v189_v59, %v188_v58 }
  0x53   :  { %704 = vmatpush3.bf16.msra.mxu0 %v703_v10  ;;  %v172_v2 = vld [vmem:[#allocation5 + $0x370] sm:$0xff]  ;;  %v173_v3 = vld [vmem:[#allocation5 + $0x378] sm:$0xff]  ;;  %v723_v4 = vpack.c.bf16 %v141_v0, %v140_v63 }
  0x54   :  { %736 = vmatpush3.bf16.msra.mxu1 %v735_v11  ;;  %706 = vmatprep.subr.bf16.mxu0 %v705_v12  ;;  %v755_v5 = vpack.c.bf16 %v173_v3, %v172_v2  ;;  %v60_v7 = vld [vmem:[#allocation2 + $0x30] sm:$0xff] }
  0x55   :  { %738 = vmatprep.subr.bf16.mxu1 %v737_v16 }
  0x57   :  { %708 = vmatpush3.bf16.msra.mxu0 %v707_v22  ;;  %v488_v22 = vld [vmem:[%s907_s2] ss:$0 sm:$0xff] }
  0x58   :  { %740 = vmatpush3.bf16.msra.mxu1 %v739_v25  ;;  %710 = vmatprep.subr.bf16.mxu0 %v709_v26 }
  0x59   :  { %742 = vmatprep.subr.bf16.mxu1 %v741_v30 }
  0x5b   :  { %712 = vmatpush3.bf16.msra.mxu0 %v711_v36 }
  0x5c   :  { %744 = vmatpush3.bf16.msra.mxu1 %v743_v37  ;;  %714 = vmatprep.subr.bf16.mxu0 %v713_v38 }
  0x5d   :  { %746 = vmatprep.subr.bf16.mxu1 %v745_v42 }
  0x5f   :  { %716 = vmatpush3.bf16.msra.mxu0 %v715_v48 }
  0x60   :  { %748 = vmatpush3.bf16.msra.mxu1 %v747_v49  ;;  %718 = vmatprep.subr.bf16.mxu0 %v717_v50 }
  0x61   :  { %750 = vmatprep.subr.bf16.mxu1 %v749_v54 }
  0x63   :  { %720 = vmatpush3.bf16.msra.mxu0 %v719_v60 }
  0x64   :  { %752 = vmatpush3.bf16.msra.mxu1 %v751_v61  ;;  %722 = vmatprep.subr.bf16.mxu0 %v721_v62 }
  0x65   :  { %754 = vmatprep.subr.bf16.mxu1 %v753_v1 }
  0x67   :  { %724 = vmatpush3.bf16.msra.mxu0 %v723_v4 }
  0x68   :  { %756 = vmatpush3.bf16.msra.mxu1 %v755_v5 }
  0x6a   :  { %395 = vmatmul.mubr.f32.vlgmr.msra.gmra.mrb[2].mxu0 %v58_v6 }
  0x6b   :  { %465 = vmatmul.mubr.f32.vlgmr.msra.gmra.mrb[2].mxu1 %v60_v7 }
 0x11d   :  { %v521_v8 = vpop.f32.mrb[0].mxu0 }
 0x11e   :  { %v556_v9 = vpop.f32.mrb[0].mxu1  ;;  %v522_v10 = vpop.f32.mrb[1].mxu0 }
 0x11f   :  { %v523_v11 = vadd.f32 %v522_v10, %v521_v8  ;;  %v557_v12 = vpop.f32.mrb[1].mxu1 }
 0x120   :  { %v558_v13 = vadd.f32 %v557_v12, %v556_v9 }
 0x122   :  { %v327_v14 = vadd.f32 %v558_v13, %v523_v11 }
 0x13d   :  { %v591_v15 = vpop.f32.mrb[2].mxu0 }
 0x13e   :  { %v592_v16 = vpop.f32.mrb[3].mxu0  ;;  %v626_v17 = vpop.f32.mrb[2].mxu1 }
 0x13f   :  { %v593_v18 = vadd.f32 %v592_v16, %v591_v15  ;;  %v627_v19 = vpop.f32.mrb[3].mxu1 }
 0x140   :  { %v628_v20 = vadd.f32 %v627_v19, %v626_v17 }
 0x141   :  { %v397_v21 = vadd.f32 %v593_v18, %v327_v14 }
 0x143   :  { %v467_v23 = vadd.f32 %v628_v20, %v397_v21 }
 0x145   :  { %v470_v24 = vadd.f32 %v488_v22, %v467_v23 }
 0x147   :  { %471 = vst [vmem:[#allocation7] sm:$0xff] %v470_v24 }
 0x148   :  { %817 = shalt.err (!%p814_p6)
}
 0x149   :  { %s818_s16 = scalar_lea.hbm %s908_s3, 128 }
 0x14a   :  { %p819_p7 = scmp.ne.s32.totalorder %s908_s3, %s818_s16  ;;  %p822_p8 = scmp.lt.u32.totalorder %s818_s16, %s908_s3 }
 0x14c   :  { %p824_p9 = pnand %p822_p8, %p819_p7 }
 0x14e   :  { %827 = shalt.err (!%p824_p9)
}
 0x14f   :  { %481 = dma.vmem_to_hbm [thread:$0]  %s479_s12, 128, %s908_s3, [#allocation4]  }
 0x150   :  { %832 = dma.done.wait [#allocation4], 128  }
 0x151   :  { %833 = vsyncadd [#allocation4], 4294967168 }
 0x152   :  { %485 = vsyncpa [#allocation3], 1 }
 0x153   :  { %486 = vsyncpa [#allocation6], 1 }
 0x154   :  { %487 = vsyncpa [#allocation4], 1 }

</bundles_post_ra>
